<compile_context>
chip_gen: v7x
topology: tpu7x:2x2x1
jax: 0.10.0
libtpu: 0.0.40
codegen_flags: <defaults>
</compile_context>

<pallas_src>
import jax
import jax.numpy as jnp
from jax.experimental import pallas as pl
from jax.experimental.pallas import tpu as pltpu

LANE = 128


def _round_up(x, m):
    return ((x + m - 1) // m) * m


def _cdiv(a, b):
    return -(-a // b)


# ----------------------------------------------------------------------------
# Kernel: whole MLP trunk + value head, one batch tile per grid step
# ----------------------------------------------------------------------------
def _value_kernel(x_ref,
                  w1, b1, w2, b2, w3, b3, w4, b4,
                  wf, bf,
                  out_ref):
    def layer(h, w_ref, b_ref):
        y = jnp.dot(h, w_ref[...], preferred_element_type=jnp.float32) + b_ref[...]
        return jnp.maximum(y, 0.0).astype(jnp.bfloat16)

    h = x_ref[...].astype(jnp.bfloat16)   # [TILE_B, obs_pad]
    h = layer(h, w1, b1)                  # -> 128 (32 real)
    h = layer(h, w2, b2)                  # -> 128 (64 real)
    h = layer(h, w3, b3)                  # -> 128
    h = layer(h, w4, b4)                  # -> 512
    # Value head (512 -> 1): VPU broadcast-multiply + lane reduction instead of a
    # 128-lane-padded MXU pass. bf16 products are exact in f32, so this matches
    # the MXU bf16xbf16->f32 semantics of the reference.
    w_row = wf[...].astype(jnp.float32)                       # [1, 512]
    out_ref[...] = (jnp.sum(h.astype(jnp.float32) * w_row,
                            axis=-1, keepdims=True) + bf[...])  # [TILE_B, 1] f32


# ----------------------------------------------------------------------------
# Parameter construction (PyTorch-default uniform init, then padded)
# ----------------------------------------------------------------------------
def init_params(key, obs_dim):
    """Trunk layers: (W_bf16 [in_pad, out_pad128], bias_f32 [1, out_pad128]).
    Head: (w_row_bf16 [1, 512], bias_f32 [1, 1]).

    nn.Linear(in, out) init range is U(-1/sqrt(in), 1/sqrt(in)). Trunk weights are
    stored transposed ([in, out]) and zero-padded so padded units contribute
    exactly zero. The obs dim is padded only to a multiple of 8 (not 128)."""
    obs_pad = _round_up(obs_dim, 8)
    dims = [(obs_dim, 32), (32, 64), (64, 128), (128, 512)]
    pads = [(obs_pad, 128), (128, 128), (128, 128), (128, 512)]
    params = []
    k = key
    for (fin, fout), (fin_p, fout_p) in zip(dims, pads):
        k, kw, kb = jax.random.split(k, 3)
        bound = 1.0 / float(fin) ** 0.5
        w = jax.random.uniform(kw, (fin, fout), jnp.float32, -bound, bound)
        b = jax.random.uniform(kb, (fout,), jnp.float32, -bound, bound)
        w_p = jnp.zeros((fin_p, fout_p), jnp.float32).at[:fin, :fout].set(w)
        b_p = jnp.zeros((1, fout_p), jnp.float32).at[0, :fout].set(b)
        params.append((w_p.astype(jnp.bfloat16), b_p))
    # Value head 512 -> 1, stored as a single lane-dense row for VPU+XLU path.
    k, kw, kb = jax.random.split(k, 3)
    bound = 1.0 / float(512) ** 0.5
    wf = jax.random.uniform(kw, (512, 1), jnp.float32, -bound, bound)
    bfv = jax.random.uniform(kb, (1,), jnp.float32, -bound, bound)
    params.append((wf.T.astype(jnp.bfloat16), bfv.reshape(1, 1)))
    return params


# ----------------------------------------------------------------------------
# Tile selection: >=2 even grid steps (v7x megacore), tile <= 1024, min padding
# ----------------------------------------------------------------------------
def _choose_tile_b(B):
    if B <= 8:
        return 8
    max_tile = 1024
    steps = max(2, _cdiv(B, max_tile))
    if steps % 2:
        steps += 1          # even step count -> both v7x TensorCores balanced
    return _round_up(_cdiv(B, steps), 8)


# ----------------------------------------------------------------------------
# Wrapper
# ----------------------------------------------------------------------------
def value_forward(x, params):
    """x: [B, obs_dim] float32. Returns value estimates [B, 1] float32."""
    B, obs_dim = x.shape
    obs_pad = params[0][0].shape[0]

    tile_b = _choose_tile_b(B)
    b_pad = _round_up(B, tile_b)

    if b_pad == B and obs_pad == obs_dim:
        x_p = x                                   # no host-side copy; cast in-kernel
    else:
        x_p = jnp.zeros((b_pad, obs_pad), x.dtype).at[:B, :obs_dim].set(x)

    flat = [x_p]
    for w, b in params:
        flat.extend([w, b])

    x_spec = pl.BlockSpec((tile_b, obs_pad), lambda i: (i, 0))
    param_specs = []
    for w, b in params:
        # Full-array blocks, constant block index -> weights stay VMEM-resident.
        param_specs.append(pl.BlockSpec(w.shape, lambda i: (0, 0)))
        param_specs.append(pl.BlockSpec(b.shape, lambda i: (0, 0)))
    out_spec = pl.BlockSpec((tile_b, 1), lambda i: (i, 0))

    out = pl.pallas_call(
        _value_kernel,
        out_shape=jax.ShapeDtypeStruct((b_pad, 1), jnp.float32),
        grid=(b_pad // tile_b,),
        in_specs=[x_spec] + param_specs,
        out_specs=out_spec,
        compiler_params=pltpu.CompilerParams(
            dimension_semantics=("parallel",)),
    )(*flat)
    return out[:B]


# Pure-JAX reference with identical bf16-operand / f32-accumulation math.
def value_forward_ref(x, params):
    B, obs_dim = x.shape
    obs_pad = params[0][0].shape[0]
    h = jnp.zeros((B, obs_pad), jnp.bfloat16).at[:, :obs_dim].set(
        x.astype(jnp.bfloat16))
    for w, b in params[:-1]:
        y = jnp.dot(h, w, preferred_element_type=jnp.float32) + b
        h = jnp.maximum(y, 0.0).astype(jnp.bfloat16)
    wf, bf = params[-1]
    out = jnp.dot(h, wf.T, preferred_element_type=jnp.float32) + bf
    return out


if __name__ == "__main__":
    key = jax.random.PRNGKey(0)
    kx, kp = jax.random.split(key)

    batch, obs_dim = 8, 4   # e.g. CartPole-like observation
    x = jax.random.normal(kx, (batch, obs_dim), jnp.float32)
    params = init_params(kp, obs_dim)

    v = value_forward(x, params)
    v = jax.block_until_ready(v)
    assert v.shape == (batch, 1), f"bad output shape {v.shape}"

    v_ref = value_forward_ref(x, params)
    assert jnp.allclose(v, v_ref, atol=1e-2, rtol=1e-2), (
        f"value mismatch: max abs err {jnp.max(jnp.abs(v - v_ref))}")

    print("KERNEL_OK")
</pallas_src>

<mosaic_0001>
module attributes {stable_mosaic.version = 11 : i64} {
  func.func @_value_kernel(%arg0: i32, %arg1: memref<8x8xf32, #tpu.memory_space<vmem>>, %arg2: memref<8x128xbf16, #tpu.memory_space<vmem>>, %arg3: memref<1x128xf32, #tpu.memory_space<vmem>>, %arg4: memref<128x128xbf16, #tpu.memory_space<vmem>>, %arg5: memref<1x128xf32, #tpu.memory_space<vmem>>, %arg6: memref<128x128xbf16, #tpu.memory_space<vmem>>, %arg7: memref<1x128xf32, #tpu.memory_space<vmem>>, %arg8: memref<128x512xbf16, #tpu.memory_space<vmem>>, %arg9: memref<1x512xf32, #tpu.memory_space<vmem>>, %arg10: memref<1x512xbf16, #tpu.memory_space<vmem>>, %arg11: memref<1x1xf32, #tpu.memory_space<vmem>>, %arg12: memref<8x1xf32, #tpu.memory_space<vmem>>) attributes {dimension_semantics = [#tpu.dimension_semantics<parallel>], iteration_bounds = array<i64: 1>, scalar_prefetch = 0 : i64, scratch_operands = 0 : i64, tpu.core_type = #tpu.core_type<tc>, window_params = [{transform_indices = @transform_0, window_bounds = array<i64: 8, 8>}, {pipeline_mode = #tpu.pipeline_mode<synchronous>, transform_indices = @transform_1, window_bounds = array<i64: 8, 128>}, {pipeline_mode = #tpu.pipeline_mode<synchronous>, transform_indices = @transform_2, window_bounds = array<i64: 1, 128>}, {pipeline_mode = #tpu.pipeline_mode<synchronous>, transform_indices = @transform_3, window_bounds = array<i64: 128, 128>}, {pipeline_mode = #tpu.pipeline_mode<synchronous>, transform_indices = @transform_4, window_bounds = array<i64: 1, 128>}, {pipeline_mode = #tpu.pipeline_mode<synchronous>, transform_indices = @transform_5, window_bounds = array<i64: 128, 128>}, {pipeline_mode = #tpu.pipeline_mode<synchronous>, transform_indices = @transform_6, window_bounds = array<i64: 1, 128>}, {pipeline_mode = #tpu.pipeline_mode<synchronous>, transform_indices = @transform_7, window_bounds = array<i64: 128, 512>}, {pipeline_mode = #tpu.pipeline_mode<synchronous>, transform_indices = @transform_8, window_bounds = array<i64: 1, 512>}, {pipeline_mode = #tpu.pipeline_mode<synchronous>, transform_indices = @transform_9, window_bounds = array<i64: 1, 512>}, {pipeline_mode = #tpu.pipeline_mode<synchronous>, transform_indices = @transform_10, window_bounds = array<i64: 1, 1>}, {transform_indices = @transform_11, window_bounds = array<i64: 8, 1>}]} {
    %c0 = arith.constant 0 : index
    %c0_0 = arith.constant 0 : index
    %0 = vector.load %arg1[%c0, %c0_0] : memref<8x8xf32, #tpu.memory_space<vmem>>, vector<8x8xf32>
    %1 = arith.truncf %0 : vector<8x8xf32> to vector<8x8xbf16>
    %c0_1 = arith.constant 0 : index
    %c0_2 = arith.constant 0 : index
    %2 = vector.load %arg2[%c0_1, %c0_2] : memref<8x128xbf16, #tpu.memory_space<vmem>>, vector<8x128xbf16>
    %cst = arith.constant dense<0.000000e+00> : vector<8x128xf32>
    %3 = tpu.matmul %1, %2, %cst {dimension_numbers = #tpu.dot_dimension_numbers<[1], [0], [0], [1], [0, 0, 1, 1], [], []>} : vector<8x8xbf16>, vector<8x128xbf16>, vector<8x128xf32> -> vector<8x128xf32>
    %c0_3 = arith.constant 0 : index
    %c0_4 = arith.constant 0 : index
    %4 = vector.load %arg3[%c0_3, %c0_4] : memref<1x128xf32, #tpu.memory_space<vmem>>, vector<1x128xf32>
    %5 = vector.broadcast %4 : vector<1x128xf32> to vector<8x128xf32>
    %6 = arith.addf %3, %5 : vector<8x128xf32>
    %cst_5 = arith.constant 0.000000e+00 : f32
    %7 = vector.broadcast %cst_5 : f32 to vector<8x128xf32>
    %8 = arith.maximumf %6, %7 : vector<8x128xf32>
    %9 = arith.truncf %8 : vector<8x128xf32> to vector<8x128xbf16>
    %c0_6 = arith.constant 0 : index
    %c0_7 = arith.constant 0 : index
    %10 = vector.load %arg4[%c0_6, %c0_7] : memref<128x128xbf16, #tpu.memory_space<vmem>>, vector<128x128xbf16>
    %cst_8 = arith.constant dense<0.000000e+00> : vector<8x128xf32>
    %11 = tpu.matmul %9, %10, %cst_8 {dimension_numbers = #tpu.dot_dimension_numbers<[1], [0], [0], [1], [0, 0, 1, 1], [], []>} : vector<8x128xbf16>, vector<128x128xbf16>, vector<8x128xf32> -> vector<8x128xf32>
    %c0_9 = arith.constant 0 : index
    %c0_10 = arith.constant 0 : index
    %12 = vector.load %arg5[%c0_9, %c0_10] : memref<1x128xf32, #tpu.memory_space<vmem>>, vector<1x128xf32>
    %13 = vector.broadcast %12 : vector<1x128xf32> to vector<8x128xf32>
    %14 = arith.addf %11, %13 : vector<8x128xf32>
    %cst_11 = arith.constant 0.000000e+00 : f32
    %15 = vector.broadcast %cst_11 : f32 to vector<8x128xf32>
    %16 = arith.maximumf %14, %15 : vector<8x128xf32>
    %17 = arith.truncf %16 : vector<8x128xf32> to vector<8x128xbf16>
    %c0_12 = arith.constant 0 : index
    %c0_13 = arith.constant 0 : index
    %18 = vector.load %arg6[%c0_12, %c0_13] : memref<128x128xbf16, #tpu.memory_space<vmem>>, vector<128x128xbf16>
    %cst_14 = arith.constant dense<0.000000e+00> : vector<8x128xf32>
    %19 = tpu.matmul %17, %18, %cst_14 {dimension_numbers = #tpu.dot_dimension_numbers<[1], [0], [0], [1], [0, 0, 1, 1], [], []>} : vector<8x128xbf16>, vector<128x128xbf16>, vector<8x128xf32> -> vector<8x128xf32>
    %c0_15 = arith.constant 0 : index
    %c0_16 = arith.constant 0 : index
    %20 = vector.load %arg7[%c0_15, %c0_16] : memref<1x128xf32, #tpu.memory_space<vmem>>, vector<1x128xf32>
    %21 = vector.broadcast %20 : vector<1x128xf32> to vector<8x128xf32>
    %22 = arith.addf %19, %21 : vector<8x128xf32>
    %cst_17 = arith.constant 0.000000e+00 : f32
    %23 = vector.broadcast %cst_17 : f32 to vector<8x128xf32>
    %24 = arith.maximumf %22, %23 : vector<8x128xf32>
    %25 = arith.truncf %24 : vector<8x128xf32> to vector<8x128xbf16>
    %c0_18 = arith.constant 0 : index
    %c0_19 = arith.constant 0 : index
    %26 = vector.load %arg8[%c0_18, %c0_19] : memref<128x512xbf16, #tpu.memory_space<vmem>>, vector<128x512xbf16>
    %cst_20 = arith.constant dense<0.000000e+00> : vector<8x512xf32>
    %27 = tpu.matmul %25, %26, %cst_20 {dimension_numbers = #tpu.dot_dimension_numbers<[1], [0], [0], [1], [0, 0, 1, 1], [], []>} : vector<8x128xbf16>, vector<128x512xbf16>, vector<8x512xf32> -> vector<8x512xf32>
    %c0_21 = arith.constant 0 : index
    %c0_22 = arith.constant 0 : index
    %28 = vector.load %arg9[%c0_21, %c0_22] : memref<1x512xf32, #tpu.memory_space<vmem>>, vector<1x512xf32>
    %29 = vector.broadcast %28 : vector<1x512xf32> to vector<8x512xf32>
    %30 = arith.addf %27, %29 : vector<8x512xf32>
    %cst_23 = arith.constant 0.000000e+00 : f32
    %31 = vector.broadcast %cst_23 : f32 to vector<8x512xf32>
    %32 = arith.maximumf %30, %31 : vector<8x512xf32>
    %33 = arith.truncf %32 : vector<8x512xf32> to vector<8x512xbf16>
    %c0_24 = arith.constant 0 : index
    %c0_25 = arith.constant 0 : index
    %34 = vector.load %arg10[%c0_24, %c0_25] : memref<1x512xbf16, #tpu.memory_space<vmem>>, vector<1x512xbf16>
    %35 = arith.extf %34 : vector<1x512xbf16> to vector<1x512xf32>
    %36 = arith.extf %33 : vector<8x512xbf16> to vector<8x512xf32>
    %37 = vector.broadcast %35 : vector<1x512xf32> to vector<8x512xf32>
    %38 = arith.mulf %36, %37 : vector<8x512xf32>
    %cst_26 = arith.constant dense<0.000000e+00> : vector<8xf32>
    %39 = vector.multi_reduction <add>, %38, %cst_26 [1] : vector<8x512xf32> to vector<8xf32>
    %40 = vector.shape_cast %39 : vector<8xf32> to vector<8x1xf32>
    %c0_27 = arith.constant 0 : index
    %c0_28 = arith.constant 0 : index
    %41 = vector.load %arg11[%c0_27, %c0_28] : memref<1x1xf32, #tpu.memory_space<vmem>>, vector<1x1xf32>
    %42 = vector.broadcast %41 : vector<1x1xf32> to vector<8x1xf32>
    %43 = arith.addf %40, %42 : vector<8x1xf32>
    %c0_29 = arith.constant 0 : index
    %c0_30 = arith.constant 0 : index
    %44 = vector.load %arg12[%c0_29, %c0_30] : memref<8x1xf32, #tpu.memory_space<vmem>>, vector<8x1xf32>
    tpu.vector_store %arg12[%c0_29, %c0_30], %43 {strides = array<i32>} : memref<8x1xf32, #tpu.memory_space<vmem>>, vector<8x1xf32>,
    return
  }
  func.func @transform_0(%arg0: i32) -> (i32, i32) {
    %c0_i32 = arith.constant 0 : i32
    %c0_i32_0 = arith.constant 0 : i32
    return %arg0, %c0_i32 : i32, i32
  }
  func.func @transform_1(%arg0: i32) -> (i32, i32) {
    %c0_i32 = arith.constant 0 : i32
    %c0_i32_0 = arith.constant 0 : i32
    %c0_i32_1 = arith.constant 0 : i32
    return %c0_i32, %c0_i32_0 : i32, i32
  }
  func.func @transform_2(%arg0: i32) -> (i32, i32) {
    %c0_i32 = arith.constant 0 : i32
    %c0_i32_0 = arith.constant 0 : i32
    %c0_i32_1 = arith.constant 0 : i32
    return %c0_i32, %c0_i32_0 : i32, i32
  }
  func.func @transform_3(%arg0: i32) -> (i32, i32) {
    %c0_i32 = arith.constant 0 : i32
    %c0_i32_0 = arith.constant 0 : i32
    %c0_i32_1 = arith.constant 0 : i32
    return %c0_i32, %c0_i32_0 : i32, i32
  }
  func.func @transform_4(%arg0: i32) -> (i32, i32) {
    %c0_i32 = arith.constant 0 : i32
    %c0_i32_0 = arith.constant 0 : i32
    %c0_i32_1 = arith.constant 0 : i32
    return %c0_i32, %c0_i32_0 : i32, i32
  }
  func.func @transform_5(%arg0: i32) -> (i32, i32) {
    %c0_i32 = arith.constant 0 : i32
    %c0_i32_0 = arith.constant 0 : i32
    %c0_i32_1 = arith.constant 0 : i32
    return %c0_i32, %c0_i32_0 : i32, i32
  }
  func.func @transform_6(%arg0: i32) -> (i32, i32) {
    %c0_i32 = arith.constant 0 : i32
    %c0_i32_0 = arith.constant 0 : i32
    %c0_i32_1 = arith.constant 0 : i32
    return %c0_i32, %c0_i32_0 : i32, i32
  }
  func.func @transform_7(%arg0: i32) -> (i32, i32) {
    %c0_i32 = arith.constant 0 : i32
    %c0_i32_0 = arith.constant 0 : i32
    %c0_i32_1 = arith.constant 0 : i32
    return %c0_i32, %c0_i32_0 : i32, i32
  }
  func.func @transform_8(%arg0: i32) -> (i32, i32) {
    %c0_i32 = arith.constant 0 : i32
    %c0_i32_0 = arith.constant 0 : i32
    %c0_i32_1 = arith.constant 0 : i32
    return %c0_i32, %c0_i32_0 : i32, i32
  }
  func.func @transform_9(%arg0: i32) -> (i32, i32) {
    %c0_i32 = arith.constant 0 : i32
    %c0_i32_0 = arith.constant 0 : i32
    %c0_i32_1 = arith.constant 0 : i32
    return %c0_i32, %c0_i32_0 : i32, i32
  }
  func.func @transform_10(%arg0: i32) -> (i32, i32) {
    %c0_i32 = arith.constant 0 : i32
    %c0_i32_0 = arith.constant 0 : i32
    %c0_i32_1 = arith.constant 0 : i32
    return %c0_i32, %c0_i32_0 : i32, i32
  }
  func.func @transform_11(%arg0: i32) -> (i32, i32) {
    %c0_i32 = arith.constant 0 : i32
    %c0_i32_0 = arith.constant 0 : i32
    return %arg0, %c0_i32 : i32, i32
  }
}

</mosaic_0001>

<bundles_post_ra>
// kernel: tpu_custom_call.1
= control target key start
LH: loop header
LB: loop body
LE: loop exit
PB: predicated region body
PF: predicated region fallthrough
CT: control target
= control target key end

     0   :  { %s1213_s0 = inlined_call_operand.hbm [shape: f32[8,8], index: 0, kind: input, shape index: {}]   ;;  %s1214_s1 = inlined_call_operand.vmem [shape: bf16[8,128], index: 1, kind: input, shape index: {}]   ;;  %s1215_s2 = inlined_call_operand.vmem [shape: f32[1,128], index: 2, kind: input, shape index: {}]   ;;  %s1216_s3 = inlined_call_operand.hbm [shape: bf16[128,128], index: 3, kind: input, shape index: {}]   ;;  %s1217_s4 = inlined_call_operand.vmem [shape: f32[1,128], index: 4, kind: input, shape index: {}]   ;;  %s1218_s5 = inlined_call_operand.hbm [shape: bf16[128,128], index: 5, kind: input, shape index: {}]   ;;  %s1219_s6 = inlined_call_operand.vmem [shape: f32[1,128], index: 6, kind: input, shape index: {}]   ;;  %s1220_s7 = inlined_call_operand.hbm [shape: bf16[128,512], index: 7, kind: input, shape index: {}]   ;;  %s1221_s8 = inlined_call_operand.vmem [shape: f32[1,512], index: 8, kind: input, shape index: {}]   ;;  %s1222_s9 = inlined_call_operand.vmem [shape: bf16[1,512], index: 9, kind: input, shape index: {}]   ;;  %s1223_s10 = inlined_call_operand.<no memory space> [shape: f32[1,1], index: 10, kind: input, shape index: {}]   ;;  %s1224_s11 = inlined_call_operand.vmem [shape: f32[8,1], index: 11, kind: output, shape index: {}]  }
   0x1   :  { %v16_v0 = vstv %s1223_s10 }
   0x2   :  { %17 = vst [vmem:[#allocation2] sm:$0x1] %v16_v0 }
   0x3   :  { %18 = vsyncpa [#allocation4], 0 }
   0x4   :  { %19 = vsyncpa [#allocation6], 0 }
   0x5   :  { %20 = vsyncpa [#allocation9], 0  ;;  %s1041_s19 = smov [#allocation5]   ;;  %s947_s23 = scalar_lea.hbm %s1216_s3, 1024 }
   0x6   :  { %s40_s20 = sshll.u32 %s1041_s19, 4  ;;  %p948_p0 = scmp.ne.s32.totalorder %s1216_s3, %s947_s23  ;;  %s41_s20 = int_to_ptr.vmem [resolvable:$true] %s40_s20 }
   0x7   :  { %p951_p1 = scmp.lt.u32.totalorder %s947_s23, %s1216_s3 }
   0x9   :  { %p953_p2 = pnand %p951_p1, %p948_p0 }
   0xb   :  { %956 = shalt.err (!%p953_p2)
}
   0xc   :  { %s957_s10 = scalar_lea.vmem %s41_s20, 1024  ;;  %p962_p4 = scmp.lt.s32.totalorder %s41_s20, %s41_s20 }
   0xd   :  { %p958_p3 = scmp.ne.s32.totalorder %s41_s20, %s957_s10  ;;  %p963_p5 = scmp.lt.s32.totalorder %s957_s10, %s957_s10 }
   0xf   :  { %p964_p6 = por %p963_p5, %p962_p4 }
  0x11   :  { %p965_p7 = pnand %p964_p6, %p958_p3 }
  0x13   :  { %968 = shalt.err (!%p965_p7)
}
  0x14   :  { %s1042_s28 = smov 64   ;;  %s1043_s29 = smov 4  }
  0x15   :  { %46 = dma.hbm_to_vmem [thread:$0]  %s1216_s3, 1024, %s41_s20, [#allocation6], %s1042_s28, %s1042_s28, %s1043_s29  }
  0x16   :  { %s1044_s13 = smov [#allocation3]   ;;  %s1045_s15 = smov [#allocation7]  }
  0x17   :  { %s27_s14 = sshll.u32 %s1044_s13, 4  ;;  %s54_s16 = sshll.u32 %s1045_s15, 4  ;;  %s28_s14 = int_to_ptr.vmem [resolvable:$true] %s27_s14  ;;  %s55_s16 = int_to_ptr.vmem [resolvable:$true] %s54_s16 }
  0x18   :  { %s969_s19 = scalar_lea.hbm %s1213_s0, 128 }
  0x19   :  { %p970_p8 = scmp.ne.s32.totalorder %s1213_s0, %s969_s19  ;;  %p973_p9 = scmp.lt.u32.totalorder %s969_s19, %s1213_s0 }
  0x1b   :  { %p975_p10 = pnand %p973_p9, %p970_p8 }
  0x1d   :  { %978 = shalt.err (!%p975_p10)
}
  0x1e   :  { %s979_s3 = scalar_lea.vmem %s28_s14, 128  ;;  %p984_p12 = scmp.lt.s32.totalorder %s28_s14, %s28_s14 }
  0x1f   :  { %p980_p11 = scmp.ne.s32.totalorder %s28_s14, %s979_s3  ;;  %p985_p13 = scmp.lt.s32.totalorder %s979_s3, %s979_s3 }
  0x21   :  { %p986_p0 = por %p985_p13, %p984_p12 }
  0x23   :  { %p987_p1 = pnand %p986_p0, %p980_p11 }
  0x25   :  { %990 = shalt.err (!%p987_p1)
}
  0x26   :  { %30 = dma.hbm_to_vmem [thread:$0]  %s1213_s0, 128, %s28_s14, [#allocation4]  }
  0x27   :  { %s991_s10 = scalar_lea.hbm %s1218_s5, 1024 }
  0x28   :  { %p992_p2 = scmp.ne.s32.totalorder %s1218_s5, %s991_s10  ;;  %p995_p3 = scmp.lt.u32.totalorder %s991_s10, %s1218_s5 }
  0x2a   :  { %p997_p4 = pnand %p995_p3, %p992_p2 }
  0x2c   :  { %1000 = shalt.err (!%p997_p4)
}
  0x2d   :  { %s1001_s17 = scalar_lea.vmem %s55_s16, 1024  ;;  %p1006_p6 = scmp.lt.s32.totalorder %s55_s16, %s55_s16 }
  0x2e   :  { %p1002_p5 = scmp.ne.s32.totalorder %s55_s16, %s1001_s17  ;;  %p1007_p7 = scmp.lt.s32.totalorder %s1001_s17, %s1001_s17 }
  0x30   :  { %p1008_p8 = por %p1007_p7, %p1006_p6 }
  0x32   :  { %p1009_p9 = pnand %p1008_p8, %p1002_p5 }
  0x34   :  { %1012 = shalt.err (!%p1009_p9)
}
  0x35   :  { %60 = dma.hbm_to_vmem [thread:$0]  %s1218_s5, 1024, %s55_s16, [#allocation6], %s1042_s28, %s1042_s28, %s1043_s29  }
  0x36   :  { %s1046_s18 = smov [#allocation8]   ;;  %s1013_s23 = scalar_lea.hbm %s1220_s7, 4096 }
  0x37   :  { %s68_s19 = sshll.u32 %s1046_s18, 4  ;;  %p1014_p10 = scmp.ne.s32.totalorder %s1220_s7, %s1013_s23  ;;  %s69_s19 = int_to_ptr.vmem [resolvable:$true] %s68_s19 }
  0x38   :  { %p1017_p11 = scmp.lt.u32.totalorder %s1013_s23, %s1220_s7 }
  0x3a   :  { %p1019_p12 = pnand %p1017_p11, %p1014_p10 }
  0x3c   :  { %1022 = shalt.err (!%p1019_p12)
}
  0x3d   :  { %s1023_s26 = scalar_lea.vmem %s69_s19, 4096  ;;  %p1028_p0 = scmp.lt.s32.totalorder %s69_s19, %s69_s19 }
  0x3e   :  { %p1024_p13 = scmp.ne.s32.totalorder %s69_s19, %s1023_s26  ;;  %p1029_p1 = scmp.lt.s32.totalorder %s1023_s26, %s1023_s26 }
  0x40   :  { %p1030_p2 = por %p1029_p1, %p1028_p0 }
  0x42   :  { %p1031_p3 = pnand %p1030_p2, %p1024_p13 }
  0x44   :  { %1034 = shalt.err (!%p1031_p3)
}
  0x45   :  { %s1047_s5 = smov 256   ;;  %s1048_s28 = smov 16  }
  0x46   :  { %74 = dma.hbm_to_vmem [thread:$0]  %s1220_s7, 4096, %s69_s19, [#allocation9], %s1047_s5, %s1047_s5, %s1048_s28  }
  0x47   :  { %1035 = dma.done.wait [#allocation4], 128  }
  0x48   :  { %1036 = vsyncadd [#allocation4], 4294967168 }
  0x49   :  { %1037 = dma.done.wait [#allocation6], 2048  }
  0x4a   :  { %1038 = vsyncadd [#allocation6], 4294965248 }
  0x4b   :  { %1039 = dma.done.wait [#allocation9], 4096  }
  0x4c   :  { %1040 = vsyncadd [#allocation9], 4294963200  ;;  %v1049_v1 = vmov 0.0   ;;  %vm1050_vm0 = vmmov 0   ;;  %vm108_vm1 = vcmask 1043456   ;;  %v94_v3 = vld [vmem:[#allocation3] sm:$0xff] }
  0x4d   :  { %826 = vmatprep.subr.bf16.mxu0 %v1049_v1  ;;  %828 = vmatprep.mubr.msk.bf16.mxu0 %vm1050_vm0, %v1049_v1  ;;  %v96_v2 = vld [vmem:[%s1214_s1] sm:$0xf]  ;;  %v95_v5 = vpack.c.bf16 %v94_v3, %v94_v3  ;;  %v883_v6 = vld [vmem:[#allocation5] sm:$0xff]   ;;  %vm104_vm2 = vcmask 64512   ;;  %v884_v7 = vld [vmem:[#allocation5 + $0x8] sm:$0xff]   ;;  %vm744_vm3 = vcmask 7168  }
  0x4e   :  { %832 = vmatprep.subr.bf16.mxu1 %v1049_v1  ;;  %848 = vmatprep.mubr.msk.bf16.mxu1 %vm1050_vm0, %v1049_v1  ;;  %v110_v4 = vsel %vm108_vm1, %v96_v2, 0  ;;  %v885_v8 = vld [vmem:[#allocation5 + $0x10] sm:$0xff]   ;;  %v886_v9 = vld [vmem:[#allocation5 + $0x18] sm:$0xff]   ;;  %v887_v10 = vld [vmem:[#allocation5 + $0x20] sm:$0xff]  }
  0x4f   :  { %827 = vmatpush3.bf16.msra.mxu0 %v110_v4  ;;  %833 = vmatpush3.bf16.msra.mxu1 %v883_v6  ;;  %v888_v11 = vld [vmem:[#allocation5 + $0x28] sm:$0xff]   ;;  %v889_v12 = vld [vmem:[#allocation5 + $0x30] sm:$0xff]   ;;  %v890_v13 = vld [vmem:[#allocation5 + $0x38] sm:$0xff]   ;;  %v1051_v6 = vmov 0  }
  0x50   :  { %852 = vmatprep.subr.bf16.mxu0 %v1049_v1  ;;  %834 = vmatprep.subr.bf16.mxu1 %v1049_v1  ;;  %v891_v14 = vld [vmem:[#allocation7] sm:$0xff]   ;;  %v892_v15 = vld [vmem:[#allocation7 + $0x8] sm:$0xff]   ;;  %v893_v16 = vld [vmem:[#allocation7 + $0x10] sm:$0xff]  }
  0x51   :  { %v894_v17 = vld [vmem:[#allocation7 + $0x18] sm:$0xff]   ;;  %v895_v18 = vld [vmem:[#allocation7 + $0x20] sm:$0xff]   ;;  %v896_v19 = vld [vmem:[#allocation7 + $0x28] sm:$0xff]  }
  0x52   :  { %829 = vmatmul.mubr.msk.bf16.vlgmr.msra.gmra.mrb[0].mxu0 %vm104_vm2, %v95_v5  ;;  %v753_v20 = vld [vmem:[%s1215_s2] ss:$0 sm:$0xff]  ;;  %v898_v29 = vld [vmem:[#allocation7 + $0x38] sm:$0xff]   ;;  %v899_v30 = vld [vmem:[#allocation8] ss:$16 sps:$4 sm:$0xff]  }
  0x53   :  { %868 = vmatprep.mubr.msk.bf16.mxu0 %vm1050_vm0, %v1049_v1  ;;  %835 = vmatpush3.bf16.msra.mxu1 %v884_v7  ;;  %v897_v28 = vld [vmem:[#allocation7 + $0x30] sm:$0xff]   ;;  %v904_v32 = vld [vmem:[#allocation8 + $0xc] ss:$16 sps:$4 sm:$0xff]   ;;  %v902_v52 = vld [vmem:[#allocation8 + $0x8] ss:$16 sps:$4 sm:$0xff]  }
  0x54   :  { %836 = vmatprep.subr.bf16.mxu1 %v1049_v1  ;;  %853 = vmatpush3.bf16.msra.mxu0 %v891_v14  ;;  %v901_v31 = vld [vmem:[#allocation8 + $0x4] ss:$16 sps:$4 sm:$0xff]   ;;  %v905_v34 = vld [vmem:[#allocation8 + $0x20] ss:$16 sps:$4 sm:$0xff]   ;;  %v910_v54 = vld [vmem:[#allocation8 + $0x2c] ss:$16 sps:$4 sm:$0xff]  }
  0x55   :  { %854 = vmatprep.subr.bf16.mxu0 %v1049_v1  ;;  %v907_v33 = vld [vmem:[#allocation8 + $0x24] ss:$16 sps:$4 sm:$0xff]   ;;  %v911_v36 = vld [vmem:[#allocation8 + $0x40] ss:$16 sps:$4 sm:$0xff]   ;;  %v908_v55 = vld [vmem:[#allocation8 + $0x28] ss:$16 sps:$4 sm:$0xff]  }
  0x56   :  { %v913_v35 = vld [vmem:[#allocation8 + $0x44] ss:$16 sps:$4 sm:$0xff]   ;;  %v917_v38 = vld [vmem:[#allocation8 + $0x60] ss:$16 sps:$4 sm:$0xff]   ;;  %v916_v56 = vld [vmem:[#allocation8 + $0x4c] ss:$16 sps:$4 sm:$0xff]  }
  0x57   :  { %837 = vmatpush3.bf16.msra.mxu1 %v885_v8  ;;  %v919_v37 = vld [vmem:[#allocation8 + $0x64] ss:$16 sps:$4 sm:$0xff]   ;;  %v923_v40 = vld [vmem:[#allocation8 + $0x80] ss:$16 sps:$4 sm:$0xff]   ;;  %v914_v57 = vld [vmem:[#allocation8 + $0x48] ss:$16 sps:$4 sm:$0xff]  }
  0x58   :  { %838 = vmatprep.subr.bf16.mxu1 %v1049_v1  ;;  %855 = vmatpush3.bf16.msra.mxu0 %v892_v15  ;;  %v925_v39 = vld [vmem:[#allocation8 + $0x84] ss:$16 sps:$4 sm:$0xff]   ;;  %v929_v42 = vld [vmem:[#allocation8 + $0xa0] ss:$16 sps:$4 sm:$0xff]   ;;  %v922_v58 = vld [vmem:[#allocation8 + $0x6c] ss:$16 sps:$4 sm:$0xff]   ;;  %v414_v15 = vlaneseq }
  0x59   :  { %856 = vmatprep.subr.bf16.mxu0 %v1049_v1  ;;  %v931_v41 = vld [vmem:[#allocation8 + $0xa4] ss:$16 sps:$4 sm:$0xff]   ;;  %v935_v44 = vld [vmem:[#allocation8 + $0xc0] ss:$16 sps:$4 sm:$0xff]   ;;  %v920_v59 = vld [vmem:[#allocation8 + $0x68] ss:$16 sps:$4 sm:$0xff]  }
  0x5a   :  { %v937_v43 = vld [vmem:[#allocation8 + $0xc4] ss:$16 sps:$4 sm:$0xff]   ;;  %v928_v60 = vld [vmem:[#allocation8 + $0x8c] ss:$16 sps:$4 sm:$0xff]   ;;  %v926_v61 = vld [vmem:[#allocation8 + $0x88] ss:$16 sps:$4 sm:$0xff]  }
  0x5b   :  { %839 = vmatpush3.bf16.msra.mxu1 %v886_v9  ;;  %v755_v45 = vld [vmem:[%s1217_s4] ss:$0 sm:$0xff]  ;;  %v934_v62 = vld [vmem:[#allocation8 + $0xac] ss:$16 sps:$4 sm:$0xff]   ;;  %v932_v63 = vld [vmem:[#allocation8 + $0xa8] ss:$16 sps:$4 sm:$0xff]  }
  0x5c   :  { %840 = vmatprep.subr.bf16.mxu1 %v1049_v1  ;;  %857 = vmatpush3.bf16.msra.mxu0 %v893_v16  ;;  %v940_v0 = vld [vmem:[#allocation8 + $0xcc] ss:$16 sps:$4 sm:$0xff]   ;;  %v943_v2 = vld [vmem:[#allocation8 + $0xe4] ss:$16 sps:$4 sm:$0xff]   ;;  %v941_v4 = vld [vmem:[#allocation8 + $0xe0] ss:$16 sps:$4 sm:$0xff]  }
  0x5d   :  { %858 = vmatprep.subr.bf16.mxu0 %v1049_v1  ;;  %v946_v3 = vld [vmem:[#allocation8 + $0xec] ss:$16 sps:$4 sm:$0xff]   ;;  %v944_v5 = vld [vmem:[#allocation8 + $0xe8] ss:$16 sps:$4 sm:$0xff]   ;;  %v764_v7 = vld [vmem:[%s1219_s6] ss:$0 sm:$0xff] }
  0x5e   :  { %v415_v16 = vshrl.u32 %v414_v15, 7 }
  0x5f   :  { %841 = vmatpush3.bf16.msra.mxu1 %v887_v10 }
  0x60   :  { %842 = vmatprep.subr.bf16.mxu1 %v1049_v1  ;;  %859 = vmatpush3.bf16.msra.mxu0 %v894_v17  ;;  %v416_v17 = vsub.s32 0, %v415_v16 }
  0x61   :  { %860 = vmatprep.subr.bf16.mxu0 %v1049_v1 }
  0x63   :  { %843 = vmatpush3.bf16.msra.mxu1 %v888_v11 }
  0x64   :  { %844 = vmatprep.subr.bf16.mxu1 %v1049_v1  ;;  %861 = vmatpush3.bf16.msra.mxu0 %v895_v18  ;;  %v424_v18 = vsub.s32 2, %v415_v16 }
  0x65   :  { %862 = vmatprep.subr.bf16.mxu0 %v1049_v1 }
  0x67   :  { %845 = vmatpush3.bf16.msra.mxu1 %v889_v12 }
  0x68   :  { %846 = vmatprep.subr.bf16.mxu1 %v1049_v1  ;;  %863 = vmatpush3.bf16.msra.mxu0 %v896_v19  ;;  %v412_v19 = vld [vmem:[%s1221_s8] sm:$0xf] }
  0x69   :  { %864 = vmatprep.subr.bf16.mxu0 %v1049_v1 }
  0x6b   :  { %847 = vmatpush3.bf16.msra.mxu1 %v890_v13 }
  0x6c   :  { %865 = vmatpush3.bf16.msra.mxu0 %v897_v28  ;;  %594 = vmatprep.subr.bf16.mxu1 %v901_v31 }
  0x6d   :  { %866 = vmatprep.subr.bf16.mxu0 %v1049_v1  ;;  %v938_v1 = vld [vmem:[#allocation8 + $0xc8] ss:$16 sps:$4 sm:$0xff]  }
  0x70   :  { %867 = vmatpush3.bf16.msra.mxu0 %v898_v29 }
  0x71   :  { %635 = vmatprep.subr.bf16.mxu0 %v904_v32 }
 0x125   :  { %v146_v21 = vpop.f32.mrb[0].mxu0 }
 0x126   :  { %v147_v22 = vadd.f32 %v753_v20, %v146_v21  ;;  %v830_v23 = vpop.f32.mrb[1].mxu0  ;;  %v684_v20 = vld [vmem:[%s1222_s9] sm:$0xf]  ;;  %v420_v21 = vsub.s32 1, %v415_v16 }
 0x127   :  { %v149_v24 = vpop.f32.mrb[2].mxu0  ;;  %v417_v23 = vrot.slane %v412_v19, %v416_v17 }
 0x128   :  { %v152_v25 = vmax.f32 %v147_v22, 0.0  ;;  %v831_v26 = vpop.f32.mrb[3].mxu0  ;;  %v428_v22 = vsub.s32 3, %v415_v16  ;;  %v685_v24 = vunpack.c.l.bf16 %v684_v20 }
 0x129   :  { %v421_v26 = vrot.slane %v412_v19, %v420_v21 }
 0x12a   :  { %v153_v27 = vpack.c.bf16 %v152_v25, %v152_v25  ;;  %v425_v25 = vrot.slane %v412_v19, %v424_v18  ;;  %v694_v32 = vrot.slane %v685_v24, %v416_v17 }
 0x12c   :  { %849 = vmatmul.mubr.bf16.vlgmr.msra.gmra.mrb[0].mxu1 %v153_v27  ;;  %v429_v27 = vrot.slane %v412_v19, %v428_v22 }
 0x12d   :  { %595 = vmatpush1.bf16.msra.mxu1 %v899_v30  ;;  %626 = vmatprep.mubr.bf16.mxu1 %v1051_v6  ;;  %v701_v30 = vsub.s32 4, %v415_v16 }
 0x12e   :  { %596 = vmatprep.subr.bf16.mxu1 %v907_v33 }
 0x131   :  { %597 = vmatpush1.bf16.msra.mxu1 %v905_v34 }
 0x132   :  { %598 = vmatprep.subr.bf16.mxu1 %v913_v35 }
 0x135   :  { %599 = vmatpush1.bf16.msra.mxu1 %v911_v36  ;;  %v698_v36 = vrot.slane %v685_v24, %v424_v18 }
 0x136   :  { %600 = vmatprep.subr.bf16.mxu1 %v919_v37 }
 0x139   :  { %601 = vmatpush1.bf16.msra.mxu1 %v917_v38 }
 0x13a   :  { %602 = vmatprep.subr.bf16.mxu1 %v925_v39 }
 0x13d   :  { %603 = vmatpush1.bf16.msra.mxu1 %v923_v40 }
 0x13e   :  { %604 = vmatprep.subr.bf16.mxu1 %v931_v41  ;;  %v705_v41 = vsub.s32 6, %v415_v16 }
 0x141   :  { %605 = vmatpush1.bf16.msra.mxu1 %v929_v42 }
 0x142   :  { %606 = vmatprep.subr.bf16.mxu1 %v937_v43 }
 0x145   :  { %607 = vmatpush1.bf16.msra.mxu1 %v935_v44 }
 0x146   :  { %608 = vmatprep.subr.bf16.mxu1 %v943_v2 }
 0x149   :  { %609 = vmatpush1.bf16.msra.mxu1 %v941_v4 }
 0x1ff   :  { %v259_v46 = vpop.f32.mrb[0].mxu1 }
 0x200   :  { %v260_v47 = vadd.f32 %v755_v45, %v259_v46  ;;  %v850_v48 = vpop.f32.mrb[1].mxu1 }
 0x201   :  { %v262_v49 = vpop.f32.mrb[2].mxu1  ;;  %v702_v48 = vrot.slane %v685_v24, %v701_v30 }
 0x202   :  { %v265_v50 = vmax.f32 %v260_v47, 0.0  ;;  %v851_v51 = vpop.f32.mrb[3].mxu1 }
 0x204   :  { %v266_v53 = vpack.c.bf16 %v265_v50, %v265_v50  ;;  %v714_v50 = vrot.slane %v694_v32, %v416_v17 }
 0x206   :  { %869 = vmatmul.mubr.bf16.vlgmr.msra.gmra.mrb[4].mxu0 %v266_v53  ;;  %v718_v53 = vrot.slane %v698_v36, %v416_v17 }
 0x207   :  { %636 = vmatpush1.bf16.msra.mxu0 %v902_v52  ;;  %667 = vmatprep.mubr.bf16.mxu0 %v1051_v6 }
 0x208   :  { %637 = vmatprep.subr.bf16.mxu0 %v910_v54 }
 0x20b   :  { %638 = vmatpush1.bf16.msra.mxu0 %v908_v55  ;;  %v706_v55 = vrot.slane %v685_v24, %v705_v41 }
 0x20c   :  { %639 = vmatprep.subr.bf16.mxu0 %v916_v56 }
 0x20f   :  { %640 = vmatpush1.bf16.msra.mxu0 %v914_v57 }
 0x210   :  { %641 = vmatprep.subr.bf16.mxu0 %v922_v58 }
 0x213   :  { %642 = vmatpush1.bf16.msra.mxu0 %v920_v59  ;;  %v722_v59 = vrot.slane %v702_v48, %v416_v17 }
 0x214   :  { %643 = vmatprep.subr.bf16.mxu0 %v928_v60 }
 0x217   :  { %644 = vmatpush1.bf16.msra.mxu0 %v926_v61 }
 0x218   :  { %645 = vmatprep.subr.bf16.mxu0 %v934_v62 }
 0x21b   :  { %646 = vmatpush1.bf16.msra.mxu0 %v932_v63  ;;  %v726_v63 = vrot.slane %v706_v55, %v416_v17 }
 0x21c   :  { %647 = vmatprep.subr.bf16.mxu0 %v940_v0 }
 0x21f   :  { %648 = vmatpush1.bf16.msra.mxu0 %v938_v1 }
 0x220   :  { %649 = vmatprep.subr.bf16.mxu0 %v946_v3 }
 0x223   :  { %650 = vmatpush1.bf16.msra.mxu0 %v944_v5  ;;  %v805_v5 = vld [vmem:[#allocation2] ss:$0 sm:$0xff] }
 0x2d9   :  { %v372_v8 = vpop.f32.mrb[4].mxu0 }
 0x2da   :  { %v373_v9 = vadd.f32 %v764_v7, %v372_v8  ;;  %v870_v10 = vpop.f32.mrb[5].mxu0 }
 0x2db   :  { %v375_v11 = vpop.f32.mrb[6].mxu0 }
 0x2dc   :  { %v378_v12 = vmax.f32 %v373_v9, 0.0  ;;  %v871_v13 = vpop.f32.mrb[7].mxu0 }
 0x2de   :  { %v379_v14 = vpack.c.bf16 %v378_v12, %v378_v12 }
 0x2e0   :  { %627 = vmatmul.mubr.bf16.vlgmr.msra.gmra.mrb[4].mxu1 %v379_v14  ;;  %668 = vmatmul.mubr.bf16.vlgmr.msra.gmra.mrb[8].mxu0 %v379_v14 }
 0x3b3   :  { %v628_v28 = vpop.f32.mrb[4].mxu1  ;;  %v669_v29 = vpop.f32.mrb[8].mxu0 }
 0x3b4   :  { %v629_v31 = vadd.f32 %v628_v28, %v417_v23  ;;  %v670_v33 = vadd.f32 %v669_v29, %v425_v25  ;;  %v630_v34 = vpop.f32.mrb[5].mxu1  ;;  %v671_v35 = vpop.f32.mrb[9].mxu0 }
 0x3b5   :  { %v631_v37 = vadd.f32 %v630_v34, %v421_v26  ;;  %v672_v38 = vadd.f32 %v671_v35, %v429_v27  ;;  %v632_v39 = vpop.f32.mrb[6].mxu1  ;;  %v673_v40 = vpop.f32.mrb[10].mxu0 }
 0x3b6   :  { %v676_v42 = vmax.f32 %v629_v31, 0.0  ;;  %v678_v43 = vmax.f32 %v670_v33, 0.0  ;;  %v633_v44 = vpop.f32.mrb[7].mxu1  ;;  %v674_v45 = vpop.f32.mrb[11].mxu0 }
 0x3b7   :  { %v677_v46 = vmax.f32 %v631_v37, 0.0  ;;  %v679_v47 = vmax.f32 %v672_v38, 0.0 }
 0x3b8   :  { %v680_v49 = vpack.c.bf16 %v676_v42, %v676_v42  ;;  %v682_v51 = vpack.c.bf16 %v678_v43, %v678_v43 }
 0x3b9   :  { %v681_v52 = vpack.c.bf16 %v677_v46, %v677_v46  ;;  %v683_v54 = vpack.c.bf16 %v679_v47, %v679_v47 }
 0x3ba   :  { %v686_v56 = vunpack.c.l.bf16 %v680_v49  ;;  %v688_v57 = vunpack.c.l.bf16 %v682_v51 }
 0x3bb   :  { %v687_v58 = vunpack.c.l.bf16 %v681_v52  ;;  %v689_v62 = vunpack.c.l.bf16 %v683_v54 }
 0x3bc   :  { %v727_v60 = vmul.f32 %v714_v50, %v686_v56  ;;  %v729_v0 = vmul.f32 %v722_v59, %v688_v57 }
 0x3bd   :  { %v728_v61 = vmul.f32 %v718_v53, %v687_v58  ;;  %v730_v2 = vmul.f32 %v726_v63, %v689_v62 }
 0x3bf   :  { %v731_v1 = vadd.f32 %v728_v61, %v727_v60 }
 0x3c1   :  { %v732_v3 = vadd.f32 %v731_v1, %v729_v0 }
 0x3c3   :  { %v733_v4 = vadd.f32 %v732_v3, %v730_v2 }
 0x3c5   :  { %734 = vadd.xlane.f32.xlu0 %v733_v4 }
 0x452   :  { %v735_v6 = vpop.xlane.xlu0 %734 }
 0x453   :  { %v743_v7 = vadd.f32 %v805_v5, %v735_v6 }
 0x455   :  { %745 = vst.msk [vmem:[%s1224_s11] sm:$0xff] %vm744_vm3, %v743_v7 }
 0x456   :  { %750 = vsyncpa [#allocation4], 1 }
 0x457   :  { %751 = vsyncpa [#allocation6], 1 }
 0x458   :  { %752 = vsyncpa [#allocation9], 1 }

</bundles_post_ra>
